<compile_context>
chip_gen: v7x
topology: tpu7x:2x2x1
jax: 0.10.0
libtpu: 0.0.40
codegen_flags: <defaults>
</compile_context>

<pallas_src>
import functools
from math import sqrt

import jax
import jax.numpy as jnp
from jax import lax
from jax.experimental import pallas as pl
from jax.experimental.pallas import tpu as pltpu


def _mha_kernel(x_ref, wqkv_ref, bqkv_ref, wo_ref, bo_ref, out_ref,
                qkv_ref, acc_ref, *, num_heads, head_dim, seq_len, block_batch):
    """One grid step == `block_batch` batch elements (block of block_batch*S rows)."""
    E = num_heads * head_dim
    rows = block_batch * seq_len
    mm_dtype = qkv_ref.dtype            # MXU operand dtype (f32 or bf16)

    # One wide fused QKV projection over every row of the block (single MXU
    # matmul), stored to VMEM scratch so per-head slices are vector loads.
    qkv_ref[...] = (
        jnp.dot(x_ref[...], wqkv_ref[...], preferred_element_type=jnp.float32)
        + bqkv_ref[...]
    ).astype(qkv_ref.dtype)

    # Output accumulator lives in VMEM (bounds vreg pressure across the head
    # loop); output bias is folded into the init so it is added once per block.
    acc_ref[...] = jnp.zeros((rows, E), jnp.float32) + bo_ref[...]

    def batch_body(b, carry):
        r0 = b * seq_len
        if seq_len % 8 == 0:
            r0 = pl.multiple_of(r0, 8)

        # TODO(synk): for num_heads >= 8, batch the per-head matmuls into one
        # head-batched dot_general on an (H, S, Dh) layout (single VMEM relayout)
        # to amortize MXU push/drain across heads.
        for h in range(num_heads):
            c = h * head_dim
            qh = qkv_ref[pl.ds(r0, seq_len), pl.ds(c, head_dim)]              # (S, Dh)
            kh = qkv_ref[pl.ds(r0, seq_len), pl.ds(E + c, head_dim)]          # (S, Dh)
            vh = qkv_ref[pl.ds(r0, seq_len), pl.ds(2 * E + c, head_dim)]      # (S, Dh)

            # scores = q @ k.T  (1/sqrt(Dh) already folded into Wq/bq)
            scores = lax.dot_general(qh, kh, (((1,), (1,)), ((), ())),
                                     preferred_element_type=jnp.float32)      # (S, S)

            # numerically-stable softmax; exact normalization, all f32 on VPU
            m = jnp.max(scores, axis=-1, keepdims=True)
            p = jnp.exp(scores - m)
            denom = jnp.sum(p, axis=-1, keepdims=True)
            weights = p / denom

            ctx = jnp.dot(weights.astype(mm_dtype), vh,
                          preferred_element_type=jnp.float32)                 # (S, Dh)

            # Fold the head-concat into the output projection: acc += ctx @ Wo_h.
            acc_ref[pl.ds(r0, seq_len), :] += jnp.dot(
                ctx.astype(mm_dtype), wo_ref[h],
                preferred_element_type=jnp.float32)
        return carry

    lax.fori_loop(0, block_batch, batch_body, 0)

    # Single lane-dense store per grid block.
    out_ref[...] = acc_ref[...].astype(out_ref.dtype)


def multi_head_attention(hidden_state, params, *, num_heads, block_batch=None,
                         matmul_dtype=None):
    B, S, E = hidden_state.shape
    head_dim = E // num_heads
    wq, bq, wk, bk, wv, bv, wo, bo = params
    mm_dtype = jnp.dtype(matmul_dtype) if matmul_dtype is not None else hidden_state.dtype
    scale = 1.0 / sqrt(float(head_dim))

    # --- pack parameters (wrapper-side; traced once under jit / cheap eagerly) ---
    def pack_w(w):  # (H, E, Dh) -> (E, H*Dh) so (x @ packed)[:, h*Dh:(h+1)*Dh] == x @ w[h]
        return jnp.transpose(w, (1, 0, 2)).reshape(E, num_heads * head_dim)

    # Fold the 1/sqrt(Dh) attention scale into the Q weights/bias (constant fold).
    w_qkv = jnp.concatenate(
        [pack_w(wq) * scale, pack_w(wk), pack_w(wv)], axis=-1).astype(mm_dtype)   # (E, 3E)
    b_qkv = jnp.concatenate(
        [bq.reshape(1, E) * scale, bk.reshape(1, E), bv.reshape(1, E)],
        axis=-1).astype(jnp.float32)                                              # (1, 3E)
    wo_heads = wo.reshape(num_heads, head_dim, E).astype(mm_dtype)                # (H, Dh, E)
    bo2 = bo.reshape(1, E).astype(jnp.float32)                                    # (1, E)

    # --- block policy ---------------------------------------------------------
    # Tiny problems: one grid step (per-step overhead dominates on single-TC
    # v5e/v6e).  Large problems: split the batch so the per-block VMEM footprint
    # (x + qkv scratch + acc + out, plus double-buffered x/out) stays well under
    # the v7x 64 MiB budget and multiple grid steps feed pipelining / 2 TCs.
    if block_batch is None:
        per_batch_bytes = S * E * 4 * 6            # x + 3E qkv scratch + acc + out (f32)
        budget = 6 << 20
        if B * per_batch_bytes <= budget:
            block_batch = B
        else:
            block_batch = max(1, budget // per_batch_bytes)
            while B % block_batch:
                block_batch -= 1
    assert B % block_batch == 0, "block_batch must divide B"
    num_blocks = B // block_batch
    rows = block_batch * S
    if num_blocks > 1:
        assert rows % 8 == 0, "per-block rows must be a multiple of 8 when grid > 1"
    if block_batch > 1:
        assert S % 8 == 0, "seq_len must be a multiple of 8 to pack several batches per block"

    # Flatten (B, S, E) -> (B*S, E); free XLA reshape, gives row-block tiles.
    x2d = hidden_state.reshape(B * S, E).astype(mm_dtype)

    kernel = functools.partial(_mha_kernel, num_heads=num_heads, head_dim=head_dim,
                               seq_len=S, block_batch=block_batch)

    full2 = lambda i: (0, 0)
    full3 = lambda i: (0, 0, 0)

    out2d = pl.pallas_call(
        kernel,
        out_shape=jax.ShapeDtypeStruct((B * S, E), hidden_state.dtype),
        grid_spec=pltpu.PrefetchScalarGridSpec(
            num_scalar_prefetch=0,
            grid=(num_blocks,),
            in_specs=[
                pl.BlockSpec((rows, E), lambda i: (i, 0)),       # x rows for this block
                pl.BlockSpec((E, 3 * E), full2),                 # fused W_qkv
                pl.BlockSpec((1, 3 * E), full2),                 # fused b_qkv (f32)
                pl.BlockSpec((num_heads, head_dim, E), full3),   # Wo per head (H, Dh, E)
                pl.BlockSpec((1, E), full2),                     # bo (f32)
            ],
            out_specs=pl.BlockSpec((rows, E), lambda i: (i, 0)),
            scratch_shapes=[
                pltpu.VMEM((rows, 3 * E), mm_dtype),             # fused QKV activations
                pltpu.VMEM((rows, E), jnp.float32),              # output accumulator
            ],
        ),
        compiler_params=pltpu.CompilerParams(
            dimension_semantics=("parallel",)),
    )(x2d, w_qkv, b_qkv, wo_heads, bo2)

    return out2d.reshape(B, S, E)


def reference_mha(x, params, *, num_heads):
    wq, bq, wk, bk, wv, bv, wo, bo = params
    B, S, E = x.shape
    head_dim = E // num_heads
    outs = []
    for h in range(num_heads):
        q = x @ wq[h] + bq[h]
        k = x @ wk[h] + bk[h]
        v = x @ wv[h] + bv[h]
        scores = jnp.einsum("bqd,bkd->bqk", q, k) / sqrt(head_dim)
        w = jax.nn.softmax(scores, axis=-1)
        outs.append(jnp.einsum("bqk,bkd->bqd", w, v))
    concat = jnp.concatenate(outs, axis=-1)
    return concat @ wo + bo


if __name__ == "__main__":
    # Small, DNA-BERT-like config (hidden_size=32, num_attention_heads=4).
    B, S, E, H = 2, 8, 32, 4
    Dh = E // H

    key = jax.random.PRNGKey(0)
    ks = jax.random.split(key, 9)
    x = jax.random.normal(ks[0], (B, S, E), dtype=jnp.float32)

    # Deterministic synthetic parameters (nn.Linear shapes, pre-transposed to
    # x @ W orientation).
    wq = jax.random.normal(ks[1], (H, E, Dh), dtype=jnp.float32) * 0.1
    bq = jax.random.normal(ks[2], (H, Dh), dtype=jnp.float32) * 0.1
    wk = jax.random.normal(ks[3], (H, E, Dh), dtype=jnp.float32) * 0.1
    bk = jax.random.normal(ks[4], (H, Dh), dtype=jnp.float32) * 0.1
    wv = jax.random.normal(ks[5], (H, E, Dh), dtype=jnp.float32) * 0.1
    bv = jax.random.normal(ks[6], (H, Dh), dtype=jnp.float32) * 0.1
    wo = jax.random.normal(ks[7], (E, E), dtype=jnp.float32) * 0.1
    bo = jax.random.normal(ks[8], (1, E), dtype=jnp.float32) * 0.1
    params = (wq, bq, wk, bk, wv, bv, wo, bo)

    ref = reference_mha(x, params, num_heads=H)

    # f32 path: exact softmax normalization + f32 MXU accumulation.
    out = multi_head_attention(x, params, num_heads=H)
    out = jax.block_until_ready(out)
    assert out.shape == (B, S, E)
    assert jnp.allclose(out, ref, atol=1e-3, rtol=1e-3), "f32 kernel mismatch vs JAX reference"

    # bf16-MXU path (perf config for real DNA-BERT sizes): operands bf16, f32 accum.
    out_bf16 = multi_head_attention(x, params, num_heads=H, matmul_dtype=jnp.bfloat16)
    out_bf16 = jax.block_until_ready(out_bf16)
    assert jnp.allclose(out_bf16, ref, atol=1e-1, rtol=1e-1), "bf16 kernel diverged from reference"

    print("KERNEL_OK")
</pallas_src>

<mosaic_0001>
module attributes {stable_mosaic.version = 11 : i64} {
  func.func @_mha_kernel(%arg0: i32, %arg1: memref<16x32xf32, #tpu.memory_space<vmem>>, %arg2: memref<32x96xf32, #tpu.memory_space<vmem>>, %arg3: memref<1x96xf32, #tpu.memory_space<vmem>>, %arg4: memref<4x8x32xf32, #tpu.memory_space<vmem>>, %arg5: memref<1x32xf32, #tpu.memory_space<vmem>>, %arg6: memref<16x32xf32, #tpu.memory_space<vmem>>, %arg7: memref<16x96xf32, #tpu.memory_space<vmem>>, %arg8: memref<16x32xf32, #tpu.memory_space<vmem>>) attributes {dimension_semantics = [#tpu.dimension_semantics<parallel>], iteration_bounds = array<i64: 1>, scalar_prefetch = 0 : i64, scratch_operands = 2 : i64, tpu.core_type = #tpu.core_type<tc>, window_params = [{transform_indices = @transform_0, window_bounds = array<i64: 16, 32>}, {pipeline_mode = #tpu.pipeline_mode<synchronous>, transform_indices = @transform_1, window_bounds = array<i64: 32, 96>}, {pipeline_mode = #tpu.pipeline_mode<synchronous>, transform_indices = @transform_2, window_bounds = array<i64: 1, 96>}, {pipeline_mode = #tpu.pipeline_mode<synchronous>, transform_indices = @transform_3, window_bounds = array<i64: 4, 8, 32>}, {pipeline_mode = #tpu.pipeline_mode<synchronous>, transform_indices = @transform_4, window_bounds = array<i64: 1, 32>}, {transform_indices = @transform_5, window_bounds = array<i64: 16, 32>}]} {
    %c0 = arith.constant 0 : index
    %c0_0 = arith.constant 0 : index
    %0 = vector.load %arg1[%c0, %c0_0] : memref<16x32xf32, #tpu.memory_space<vmem>>, vector<16x32xf32>
    %c0_1 = arith.constant 0 : index
    %c0_2 = arith.constant 0 : index
    %1 = vector.load %arg2[%c0_1, %c0_2] : memref<32x96xf32, #tpu.memory_space<vmem>>, vector<32x96xf32>
    %cst = arith.constant dense<0.000000e+00> : vector<16x96xf32>
    %2 = tpu.matmul %0, %1, %cst {dimension_numbers = #tpu.dot_dimension_numbers<[1], [0], [0], [1], [0, 0, 1, 1], [], []>} : vector<16x32xf32>, vector<32x96xf32>, vector<16x96xf32> -> vector<16x96xf32>
    %c0_3 = arith.constant 0 : index
    %c0_4 = arith.constant 0 : index
    %3 = vector.load %arg3[%c0_3, %c0_4] : memref<1x96xf32, #tpu.memory_space<vmem>>, vector<1x96xf32>
    %4 = vector.broadcast %3 : vector<1x96xf32> to vector<16x96xf32>
    %5 = arith.addf %2, %4 : vector<16x96xf32>
    %c0_5 = arith.constant 0 : index
    %c0_6 = arith.constant 0 : index
    %6 = vector.load %arg7[%c0_5, %c0_6] : memref<16x96xf32, #tpu.memory_space<vmem>>, vector<16x96xf32>
    tpu.vector_store %arg7[%c0_5, %c0_6], %5 {strides = array<i32>} : memref<16x96xf32, #tpu.memory_space<vmem>>, vector<16x96xf32>,
    %cst_7 = arith.constant 0.000000e+00 : f32
    %7 = vector.broadcast %cst_7 : f32 to vector<16x32xf32>
    %c0_8 = arith.constant 0 : index
    %c0_9 = arith.constant 0 : index
    %8 = vector.load %arg5[%c0_8, %c0_9] : memref<1x32xf32, #tpu.memory_space<vmem>>, vector<1x32xf32>
    %9 = vector.broadcast %8 : vector<1x32xf32> to vector<16x32xf32>
    %10 = arith.addf %7, %9 : vector<16x32xf32>
    %c0_10 = arith.constant 0 : index
    %c0_11 = arith.constant 0 : index
    %11 = vector.load %arg8[%c0_10, %c0_11] : memref<16x32xf32, #tpu.memory_space<vmem>>, vector<16x32xf32>
    tpu.vector_store %arg8[%c0_10, %c0_11], %10 {strides = array<i32>} : memref<16x32xf32, #tpu.memory_space<vmem>>, vector<16x32xf32>,
    %c0_i32 = arith.constant 0 : i32
    %c2_i32 = arith.constant 2 : i32
    %12 = arith.addi %c0_i32, %c2_i32 : i32
    %c1_i32 = arith.constant 1 : i32
    scf.for %arg9 = %c0_i32 to %12 step %c1_i32  : i32 {
      %c8_i32 = arith.constant 8 : i32
      %15 = arith.muli %arg9, %c8_i32 : i32
      %16 = tpu.assume_multiple %15, 8 : i32
      %17 = arith.index_cast %16 : i32 to index
      %c0_17 = arith.constant 0 : index
      %18 = vector.load %arg7[%17, %c0_17] : memref<16x96xf32, #tpu.memory_space<vmem>>, vector<8x8xf32>
      %19 = arith.index_cast %16 : i32 to index
      %c32 = arith.constant 32 : index
      %20 = vector.load %arg7[%19, %c32] : memref<16x96xf32, #tpu.memory_space<vmem>>, vector<8x8xf32>
      %21 = arith.index_cast %16 : i32 to index
      %c64 = arith.constant 64 : index
      %22 = vector.load %arg7[%21, %c64] : memref<16x96xf32, #tpu.memory_space<vmem>>, vector<8x8xf32>
      %cst_18 = arith.constant dense<0.000000e+00> : vector<8x8xf32>
      %23 = tpu.matmul %18, %20, %cst_18 {dimension_numbers = #tpu.dot_dimension_numbers<[1], [1], [0], [0], [0, 0, 1, 0], [], []>} : vector<8x8xf32>, vector<8x8xf32>, vector<8x8xf32> -> vector<8x8xf32>
      %cst_19 = arith.constant dense<0xFF800000> : vector<8xf32>
      %24 = vector.multi_reduction <maximumf>, %23, %cst_19 [1] : vector<8x8xf32> to vector<8xf32>
      %25 = vector.shape_cast %24 : vector<8xf32> to vector<8x1xf32>
      %26 = vector.broadcast %25 : vector<8x1xf32> to vector<8x8xf32>
      %27 = arith.subf %23, %26 : vector<8x8xf32>
      %28 = math.exp %27 : vector<8x8xf32>
      %cst_20 = arith.constant dense<0.000000e+00> : vector<8xf32>
      %29 = vector.multi_reduction <add>, %28, %cst_20 [1] : vector<8x8xf32> to vector<8xf32>
      %30 = vector.shape_cast %29 : vector<8xf32> to vector<8x1xf32>
      %31 = vector.broadcast %30 : vector<8x1xf32> to vector<8x8xf32>
      %32 = arith.divf %28, %31 : vector<8x8xf32>
      %cst_21 = arith.constant dense<0.000000e+00> : vector<8x8xf32>
      %33 = tpu.matmul %32, %22, %cst_21 {dimension_numbers = #tpu.dot_dimension_numbers<[1], [0], [0], [1], [0, 0, 1, 1], [], []>} : vector<8x8xf32>, vector<8x8xf32>, vector<8x8xf32> -> vector<8x8xf32>
      %34 = arith.index_cast %16 : i32 to index
      %c0_22 = arith.constant 0 : index
      %35 = vector.load %arg8[%34, %c0_22] : memref<16x32xf32, #tpu.memory_space<vmem>>, vector<8x32xf32>
      %c0_23 = arith.constant 0 : index
      %c0_24 = arith.constant 0 : index
      %c0_25 = arith.constant 0 : index
      %36 = vector.load %arg4[%c0_23, %c0_24, %c0_25] : memref<4x8x32xf32, #tpu.memory_space<vmem>>, vector<1x8x32xf32>
      %37 = vector.shape_cast %36 : vector<1x8x32xf32> to vector<8x32xf32>
      %cst_26 = arith.constant dense<0.000000e+00> : vector<8x32xf32>
      %38 = tpu.matmul %33, %37, %cst_26 {dimension_numbers = #tpu.dot_dimension_numbers<[1], [0], [0], [1], [0, 0, 1, 1], [], []>} : vector<8x8xf32>, vector<8x32xf32>, vector<8x32xf32> -> vector<8x32xf32>
      %39 = arith.addf %35, %38 : vector<8x32xf32>
      %40 = arith.index_cast %16 : i32 to index
      %c0_27 = arith.constant 0 : index
      %41 = vector.load %arg8[%40, %c0_27] : memref<16x32xf32, #tpu.memory_space<vmem>>, vector<8x32xf32>
      tpu.vector_store %arg8[%40, %c0_27], %39 {strides = array<i32>} : memref<16x32xf32, #tpu.memory_space<vmem>>, vector<8x32xf32>,
      %42 = arith.index_cast %16 : i32 to index
      %c8 = arith.constant 8 : index
      %43 = vector.load %arg7[%42, %c8] : memref<16x96xf32, #tpu.memory_space<vmem>>, vector<8x8xf32>
      %44 = arith.index_cast %16 : i32 to index
      %c40 = arith.constant 40 : index
      %45 = vector.load %arg7[%44, %c40] : memref<16x96xf32, #tpu.memory_space<vmem>>, vector<8x8xf32>
      %46 = arith.index_cast %16 : i32 to index
      %c72 = arith.constant 72 : index
      %47 = vector.load %arg7[%46, %c72] : memref<16x96xf32, #tpu.memory_space<vmem>>, vector<8x8xf32>
      %cst_28 = arith.constant dense<0.000000e+00> : vector<8x8xf32>
      %48 = tpu.matmul %43, %45, %cst_28 {dimension_numbers = #tpu.dot_dimension_numbers<[1], [1], [0], [0], [0, 0, 1, 0], [], []>} : vector<8x8xf32>, vector<8x8xf32>, vector<8x8xf32> -> vector<8x8xf32>
      %cst_29 = arith.constant dense<0xFF800000> : vector<8xf32>
      %49 = vector.multi_reduction <maximumf>, %48, %cst_29 [1] : vector<8x8xf32> to vector<8xf32>
      %50 = vector.shape_cast %49 : vector<8xf32> to vector<8x1xf32>
      %51 = vector.broadcast %50 : vector<8x1xf32> to vector<8x8xf32>
      %52 = arith.subf %48, %51 : vector<8x8xf32>
      %53 = math.exp %52 : vector<8x8xf32>
      %cst_30 = arith.constant dense<0.000000e+00> : vector<8xf32>
      %54 = vector.multi_reduction <add>, %53, %cst_30 [1] : vector<8x8xf32> to vector<8xf32>
      %55 = vector.shape_cast %54 : vector<8xf32> to vector<8x1xf32>
      %56 = vector.broadcast %55 : vector<8x1xf32> to vector<8x8xf32>
      %57 = arith.divf %53, %56 : vector<8x8xf32>
      %cst_31 = arith.constant dense<0.000000e+00> : vector<8x8xf32>
      %58 = tpu.matmul %57, %47, %cst_31 {dimension_numbers = #tpu.dot_dimension_numbers<[1], [0], [0], [1], [0, 0, 1, 1], [], []>} : vector<8x8xf32>, vector<8x8xf32>, vector<8x8xf32> -> vector<8x8xf32>
      %59 = arith.index_cast %16 : i32 to index
      %c0_32 = arith.constant 0 : index
      %60 = vector.load %arg8[%59, %c0_32] : memref<16x32xf32, #tpu.memory_space<vmem>>, vector<8x32xf32>
      %c1 = arith.constant 1 : index
      %c0_33 = arith.constant 0 : index
      %c0_34 = arith.constant 0 : index
      %61 = vector.load %arg4[%c1, %c0_33, %c0_34] : memref<4x8x32xf32, #tpu.memory_space<vmem>>, vector<1x8x32xf32>
      %62 = vector.shape_cast %61 : vector<1x8x32xf32> to vector<8x32xf32>
      %cst_35 = arith.constant dense<0.000000e+00> : vector<8x32xf32>
      %63 = tpu.matmul %58, %62, %cst_35 {dimension_numbers = #tpu.dot_dimension_numbers<[1], [0], [0], [1], [0, 0, 1, 1], [], []>} : vector<8x8xf32>, vector<8x32xf32>, vector<8x32xf32> -> vector<8x32xf32>
      %64 = arith.addf %60, %63 : vector<8x32xf32>
      %65 = arith.index_cast %16 : i32 to index
      %c0_36 = arith.constant 0 : index
      %66 = vector.load %arg8[%65, %c0_36] : memref<16x32xf32, #tpu.memory_space<vmem>>, vector<8x32xf32>
      tpu.vector_store %arg8[%65, %c0_36], %64 {strides = array<i32>} : memref<16x32xf32, #tpu.memory_space<vmem>>, vector<8x32xf32>,
      %67 = arith.index_cast %16 : i32 to index
      %c16 = arith.constant 16 : index
      %68 = vector.load %arg7[%67, %c16] : memref<16x96xf32, #tpu.memory_space<vmem>>, vector<8x8xf32>
      %69 = arith.index_cast %16 : i32 to index
      %c48 = arith.constant 48 : index
      %70 = vector.load %arg7[%69, %c48] : memref<16x96xf32, #tpu.memory_space<vmem>>, vector<8x8xf32>
      %71 = arith.index_cast %16 : i32 to index
      %c80 = arith.constant 80 : index
      %72 = vector.load %arg7[%71, %c80] : memref<16x96xf32, #tpu.memory_space<vmem>>, vector<8x8xf32>
      %cst_37 = arith.constant dense<0.000000e+00> : vector<8x8xf32>
      %73 = tpu.matmul %68, %70, %cst_37 {dimension_numbers = #tpu.dot_dimension_numbers<[1], [1], [0], [0], [0, 0, 1, 0], [], []>} : vector<8x8xf32>, vector<8x8xf32>, vector<8x8xf32> -> vector<8x8xf32>
      %cst_38 = arith.constant dense<0xFF800000> : vector<8xf32>
      %74 = vector.multi_reduction <maximumf>, %73, %cst_38 [1] : vector<8x8xf32> to vector<8xf32>
      %75 = vector.shape_cast %74 : vector<8xf32> to vector<8x1xf32>
      %76 = vector.broadcast %75 : vector<8x1xf32> to vector<8x8xf32>
      %77 = arith.subf %73, %76 : vector<8x8xf32>
      %78 = math.exp %77 : vector<8x8xf32>
      %cst_39 = arith.constant dense<0.000000e+00> : vector<8xf32>
      %79 = vector.multi_reduction <add>, %78, %cst_39 [1] : vector<8x8xf32> to vector<8xf32>
      %80 = vector.shape_cast %79 : vector<8xf32> to vector<8x1xf32>
      %81 = vector.broadcast %80 : vector<8x1xf32> to vector<8x8xf32>
      %82 = arith.divf %78, %81 : vector<8x8xf32>
      %cst_40 = arith.constant dense<0.000000e+00> : vector<8x8xf32>
      %83 = tpu.matmul %82, %72, %cst_40 {dimension_numbers = #tpu.dot_dimension_numbers<[1], [0], [0], [1], [0, 0, 1, 1], [], []>} : vector<8x8xf32>, vector<8x8xf32>, vector<8x8xf32> -> vector<8x8xf32>
      %84 = arith.index_cast %16 : i32 to index
      %c0_41 = arith.constant 0 : index
      %85 = vector.load %arg8[%84, %c0_41] : memref<16x32xf32, #tpu.memory_space<vmem>>, vector<8x32xf32>
      %c2 = arith.constant 2 : index
      %c0_42 = arith.constant 0 : index
      %c0_43 = arith.constant 0 : index
      %86 = vector.load %arg4[%c2, %c0_42, %c0_43] : memref<4x8x32xf32, #tpu.memory_space<vmem>>, vector<1x8x32xf32>
      %87 = vector.shape_cast %86 : vector<1x8x32xf32> to vector<8x32xf32>
      %cst_44 = arith.constant dense<0.000000e+00> : vector<8x32xf32>
      %88 = tpu.matmul %83, %87, %cst_44 {dimension_numbers = #tpu.dot_dimension_numbers<[1], [0], [0], [1], [0, 0, 1, 1], [], []>} : vector<8x8xf32>, vector<8x32xf32>, vector<8x32xf32> -> vector<8x32xf32>
      %89 = arith.addf %85, %88 : vector<8x32xf32>
      %90 = arith.index_cast %16 : i32 to index
      %c0_45 = arith.constant 0 : index
      %91 = vector.load %arg8[%90, %c0_45] : memref<16x32xf32, #tpu.memory_space<vmem>>, vector<8x32xf32>
      tpu.vector_store %arg8[%90, %c0_45], %89 {strides = array<i32>} : memref<16x32xf32, #tpu.memory_space<vmem>>, vector<8x32xf32>,
      %92 = arith.index_cast %16 : i32 to index
      %c24 = arith.constant 24 : index
      %93 = vector.load %arg7[%92, %c24] : memref<16x96xf32, #tpu.memory_space<vmem>>, vector<8x8xf32>
      %94 = arith.index_cast %16 : i32 to index
      %c56 = arith.constant 56 : index
      %95 = vector.load %arg7[%94, %c56] : memref<16x96xf32, #tpu.memory_space<vmem>>, vector<8x8xf32>
      %96 = arith.index_cast %16 : i32 to index
      %c88 = arith.constant 88 : index
      %97 = vector.load %arg7[%96, %c88] : memref<16x96xf32, #tpu.memory_space<vmem>>, vector<8x8xf32>
      %cst_46 = arith.constant dense<0.000000e+00> : vector<8x8xf32>
      %98 = tpu.matmul %93, %95, %cst_46 {dimension_numbers = #tpu.dot_dimension_numbers<[1], [1], [0], [0], [0, 0, 1, 0], [], []>} : vector<8x8xf32>, vector<8x8xf32>, vector<8x8xf32> -> vector<8x8xf32>
      %cst_47 = arith.constant dense<0xFF800000> : vector<8xf32>
      %99 = vector.multi_reduction <maximumf>, %98, %cst_47 [1] : vector<8x8xf32> to vector<8xf32>
      %100 = vector.shape_cast %99 : vector<8xf32> to vector<8x1xf32>
      %101 = vector.broadcast %100 : vector<8x1xf32> to vector<8x8xf32>
      %102 = arith.subf %98, %101 : vector<8x8xf32>
      %103 = math.exp %102 : vector<8x8xf32>
      %cst_48 = arith.constant dense<0.000000e+00> : vector<8xf32>
      %104 = vector.multi_reduction <add>, %103, %cst_48 [1] : vector<8x8xf32> to vector<8xf32>
      %105 = vector.shape_cast %104 : vector<8xf32> to vector<8x1xf32>
      %106 = vector.broadcast %105 : vector<8x1xf32> to vector<8x8xf32>
      %107 = arith.divf %103, %106 : vector<8x8xf32>
      %cst_49 = arith.constant dense<0.000000e+00> : vector<8x8xf32>
      %108 = tpu.matmul %107, %97, %cst_49 {dimension_numbers = #tpu.dot_dimension_numbers<[1], [0], [0], [1], [0, 0, 1, 1], [], []>} : vector<8x8xf32>, vector<8x8xf32>, vector<8x8xf32> -> vector<8x8xf32>
      %109 = arith.index_cast %16 : i32 to index
      %c0_50 = arith.constant 0 : index
      %110 = vector.load %arg8[%109, %c0_50] : memref<16x32xf32, #tpu.memory_space<vmem>>, vector<8x32xf32>
      %c3 = arith.constant 3 : index
      %c0_51 = arith.constant 0 : index
      %c0_52 = arith.constant 0 : index
      %111 = vector.load %arg4[%c3, %c0_51, %c0_52] : memref<4x8x32xf32, #tpu.memory_space<vmem>>, vector<1x8x32xf32>
      %112 = vector.shape_cast %111 : vector<1x8x32xf32> to vector<8x32xf32>
      %cst_53 = arith.constant dense<0.000000e+00> : vector<8x32xf32>
      %113 = tpu.matmul %108, %112, %cst_53 {dimension_numbers = #tpu.dot_dimension_numbers<[1], [0], [0], [1], [0, 0, 1, 1], [], []>} : vector<8x8xf32>, vector<8x32xf32>, vector<8x32xf32> -> vector<8x32xf32>
      %114 = arith.addf %110, %113 : vector<8x32xf32>
      %115 = arith.index_cast %16 : i32 to index
      %c0_54 = arith.constant 0 : index
      %116 = vector.load %arg8[%115, %c0_54] : memref<16x32xf32, #tpu.memory_space<vmem>>, vector<8x32xf32>
      tpu.vector_store %arg8[%115, %c0_54], %114 {strides = array<i32>} : memref<16x32xf32, #tpu.memory_space<vmem>>, vector<8x32xf32>,
    }
    %c2_i32_12 = arith.constant 2 : i32
    %c0_13 = arith.constant 0 : index
    %c0_14 = arith.constant 0 : index
    %13 = vector.load %arg8[%c0_13, %c0_14] : memref<16x32xf32, #tpu.memory_space<vmem>>, vector<16x32xf32>
    %c0_15 = arith.constant 0 : index
    %c0_16 = arith.constant 0 : index
    %14 = vector.load %arg6[%c0_15, %c0_16] : memref<16x32xf32, #tpu.memory_space<vmem>>, vector<16x32xf32>
    tpu.vector_store %arg6[%c0_15, %c0_16], %13 {strides = array<i32>} : memref<16x32xf32, #tpu.memory_space<vmem>>, vector<16x32xf32>,
    return
  }
  func.func @transform_0(%arg0: i32) -> (i32, i32) {
    %c0_i32 = arith.constant 0 : i32
    %c0_i32_0 = arith.constant 0 : i32
    return %arg0, %c0_i32 : i32, i32
  }
  func.func @transform_1(%arg0: i32) -> (i32, i32) {
    %c0_i32 = arith.constant 0 : i32
    %c0_i32_0 = arith.constant 0 : i32
    %c0_i32_1 = arith.constant 0 : i32
    return %c0_i32, %c0_i32_0 : i32, i32
  }
  func.func @transform_2(%arg0: i32) -> (i32, i32) {
    %c0_i32 = arith.constant 0 : i32
    %c0_i32_0 = arith.constant 0 : i32
    %c0_i32_1 = arith.constant 0 : i32
    return %c0_i32, %c0_i32_0 : i32, i32
  }
  func.func @transform_3(%arg0: i32) -> (i32, i32, i32) {
    %c0_i32 = arith.constant 0 : i32
    %c0_i32_0 = arith.constant 0 : i32
    %c0_i32_1 = arith.constant 0 : i32
    %c0_i32_2 = arith.constant 0 : i32
    return %c0_i32, %c0_i32_0, %c0_i32_1 : i32, i32, i32
  }
  func.func @transform_4(%arg0: i32) -> (i32, i32) {
    %c0_i32 = arith.constant 0 : i32
    %c0_i32_0 = arith.constant 0 : i32
    %c0_i32_1 = arith.constant 0 : i32
    return %c0_i32, %c0_i32_0 : i32, i32
  }
  func.func @transform_5(%arg0: i32) -> (i32, i32) {
    %c0_i32 = arith.constant 0 : i32
    %c0_i32_0 = arith.constant 0 : i32
    return %arg0, %c0_i32 : i32, i32
  }
}

</mosaic_0001>

<bundles_post_ra>
// kernel: tpu_custom_call.1
= control target key start
LH: loop header
LB: loop body
LE: loop exit
PB: predicated region body
PF: predicated region fallthrough
CT: control target
= control target key end

     0   :  { %10 = vsyncpa [#allocation5], 0  ;;  %s1692_s0 = inlined_call_operand.hbm [shape: f32[16,32], index: 0, kind: input, shape index: {}]   ;;  %s1693_s1 = inlined_call_operand.hbm [shape: f32[32,96], index: 1, kind: input, shape index: {}]   ;;  %s1694_s2 = inlined_call_operand.vmem [shape: f32[1,96], index: 2, kind: input, shape index: {}]   ;;  %s1695_s3 = inlined_call_operand.hbm [shape: f32[4,8,32], index: 3, kind: input, shape index: {}]   ;;  %s1696_s4 = inlined_call_operand.vmem [shape: f32[1,32], index: 4, kind: input, shape index: {}]   ;;  %s1697_s5 = inlined_call_operand.hbm [shape: f32[16,32], index: 5, kind: output, shape index: {}]  }
   0x1   :  { %11 = vsyncpa [#allocation8], 0 }
   0x2   :  { %12 = vsyncpa [#allocation6], 0  ;;  %s1463_s18 = smov [#allocation7]   ;;  %s1464_s20 = smov [#allocation4]  }
   0x3   :  { %s30_s19 = sshll.u32 %s1463_s18, 4  ;;  %s18_s21 = sshll.u32 %s1464_s20, 4  ;;  %s31_s19 = int_to_ptr.vmem [resolvable:$true] %s30_s19  ;;  %s1512_s21 = int_to_ptr.vmem [resolvable:$true] %s18_s21 }
   0x4   :  { %s1361_s24 = scalar_lea.hbm %s1693_s1, 512 }
   0x5   :  { %p1362_p0 = scmp.ne.s32.totalorder %s1693_s1, %s1361_s24  ;;  %p1365_p1 = scmp.lt.u32.totalorder %s1361_s24, %s1693_s1 }
   0x7   :  { %p1367_p2 = pnand %p1365_p1, %p1362_p0 }
   0x9   :  { %1370 = shalt.err (!%p1367_p2)
}
   0xa   :  { %s1371_s29 = scalar_lea.vmem %s31_s19, 512  ;;  %p1376_p4 = scmp.lt.s32.totalorder %s31_s19, %s31_s19 }
   0xb   :  { %p1372_p3 = scmp.ne.s32.totalorder %s31_s19, %s1371_s29  ;;  %p1377_p5 = scmp.lt.s32.totalorder %s1371_s29, %s1371_s29 }
   0xd   :  { %p1378_p6 = por %p1377_p5, %p1376_p4 }
   0xf   :  { %p1379_p7 = pnand %p1378_p6, %p1372_p3 }
  0x11   :  { %1382 = shalt.err (!%p1379_p7)
}
  0x12   :  { %s1465_s30 = smov 128   ;;  %s1466_s6 = smov 8  }
  0x13   :  { %36 = dma.hbm_to_vmem [thread:$0]  %s1693_s1, 512, %s31_s19, [#allocation8], %s1465_s30, %s1465_s30, %s1466_s6  }
  0x14   :  { %s1383_s11 = scalar_lea.hbm %s1692_s0, 256 }
  0x15   :  { %p1384_p8 = scmp.ne.s32.totalorder %s1692_s0, %s1383_s11  ;;  %p1387_p9 = scmp.lt.u32.totalorder %s1383_s11, %s1692_s0 }
  0x17   :  { %p1389_p10 = pnand %p1387_p9, %p1384_p8 }
  0x19   :  { %1392 = shalt.err (!%p1389_p10)
}
  0x1a   :  { %s1393_s16 = scalar_lea.vmem %s1512_s21, 256  ;;  %p1398_p12 = scmp.lt.s32.totalorder %s1512_s21, %s1512_s21 }
  0x1b   :  { %p1394_p11 = scmp.ne.s32.totalorder %s1512_s21, %s1393_s16  ;;  %p1399_p13 = scmp.lt.s32.totalorder %s1393_s16, %s1393_s16 }
  0x1d   :  { %p1400_p0 = por %p1399_p13, %p1398_p12 }
  0x1f   :  { %p1401_p1 = pnand %p1400_p0, %p1394_p11 }
  0x21   :  { %1404 = shalt.err (!%p1401_p1)
}
  0x22   :  { %24 = dma.hbm_to_vmem [thread:$0]  %s1692_s0, 256, %s1512_s21, [#allocation5], %s1465_s30, %s1465_s30, %s1466_s6  }
  0x23   :  { %s1467_s18 = smov [#allocation9]   ;;  %s1405_s23 = scalar_lea.hbm %s1695_s3, 512 }
  0x24   :  { %s44_s19 = sshll.u32 %s1467_s18, 4  ;;  %p1406_p2 = scmp.ne.s32.totalorder %s1695_s3, %s1405_s23  ;;  %s45_s19 = int_to_ptr.vmem [resolvable:$true] %s44_s19 }
  0x25   :  { %p1409_p3 = scmp.lt.u32.totalorder %s1405_s23, %s1695_s3 }
  0x27   :  { %p1411_p4 = pnand %p1409_p3, %p1406_p2 }
  0x29   :  { %1414 = shalt.err (!%p1411_p4)
}
  0x2a   :  { %s1415_s28 = scalar_lea.vmem %s45_s19, 512  ;;  %p1420_p6 = scmp.lt.s32.totalorder %s45_s19, %s45_s19 }
  0x2b   :  { %p1416_p5 = scmp.ne.s32.totalorder %s45_s19, %s1415_s28  ;;  %p1421_p7 = scmp.lt.s32.totalorder %s1415_s28, %s1415_s28 }
  0x2d   :  { %p1422_p8 = por %p1421_p7, %p1420_p6 }
  0x2f   :  { %p1423_p9 = pnand %p1422_p8, %p1416_p5 }
  0x31   :  { %1426 = shalt.err (!%p1423_p9)
}
  0x32   :  { %50 = dma.hbm_to_vmem [thread:$0]  %s1695_s3, 512, %s45_s19, [#allocation8], %s1465_s30, %s1465_s30, %s1466_s6  }
  0x33   :  { %1453 = dma.done.wait [#allocation5], 256  }
  0x34   :  { %1454 = vsyncadd [#allocation5], 4294967040 }
  0x35   :  { %1455 = dma.done.wait [#allocation8], 1024  }
  0x36   :  { %1456 = vsyncadd [#allocation8], 4294966272  ;;  %vm75_vm0 = vcmask 261120   ;;  %v64_v0 = vld [vmem:[#allocation7] sm:$0xff]  ;;  %v65_v1 = vld [vmem:[#allocation7 + $0x8] sm:$0xff]  ;;  %vm157_vm1 = vcmask 785408  }
  0x37   :  { %v66_v2 = vld [vmem:[#allocation7 + $0x10] sm:$0xff]  ;;  %v1310_v3 = vpack.c.bf16 %v65_v1, %v64_v0  ;;  %v67_v4 = vld [vmem:[#allocation7 + $0x18] sm:$0xff] }
  0x38   :  { %v62_v5 = vld [vmem:[#allocation4] sm:$0xff]  ;;  %v1314_v7 = vpack.c.bf16 %v67_v4, %v66_v2  ;;  %v63_v8 = vld [vmem:[#allocation4 + $0x8] sm:$0xff] }
  0x39   :  { %v1191_v6 = vld [vmem:[%s1696_s4] ss:$0 sm:$0xff]  ;;  %1247 = vmatprep.mubr.msk.f32.mxu0 %vm75_vm0, %v62_v5  ;;  %1311 = vmatprep.subr.bf16.mxu0 %v1310_v3  ;;  %s1574_s4 = smov 0  }
  0x3a   :  { %168 = vst.msk [vmem:[#allocation3] sm:$0xff] %vm75_vm0, %v1191_v6  ;;  %169 = vst.msk [vmem:[#allocation3 + $0x8] sm:$0xff] %vm75_vm0, %v1191_v6  ;;  %1313 = vmatpush3.bf16.msra.mxu0 %v1310_v3  ;;  %v1188_v9 = vld [vmem:[%s1694_s2] ss:$0 sm:$0xff] }
  0x3b   :  { %1315 = vmatprep.subr.bf16.mxu0 %v1314_v7 }
  0x3e   :  { %1317 = vmatpush3.bf16.msra.mxu0 %v1314_v7 }
  0x41   :  { %1248 = vmatmul.mubr.msk.f32.vlgmr.msra.gmra.mrb[0].mxu0 %vm75_vm0, %v63_v8 }
 0x114   :  { %v1249_v10 = vpop.f32.mrb[0].mxu0 }
 0x115   :  { %v154_v11 = vadd.f32 %v1249_v10, %v1188_v9  ;;  %v148_v12 = vpop.f32.mrb[1].mxu0 }
 0x116   :  { %v149_v13 = vadd.f32 %v1188_v9, %v148_v12 }
 0x117   :  { %159 = vst.msk [vmem:[#allocation2 + $0x8] sm:$0xff] %vm157_vm1, %v154_v11 }
 0x118   :  { %158 = vst.msk [vmem:[#allocation2] sm:$0xff] %vm157_vm1, %v149_v13 }
 0x119 LB: > { %v1468_v14 = vmov 0.0   ;;  %vm1469_vm2 = vmmov 0   ;;  %s1192_s2 = sshll.u32 %s1461_s4, 3  ;;  %s1470_s10 = smov 96   ;;  %vm182_vm3 = vcmask 64512   ;;  %v346_v39 = vld [vmem:[#allocation9] sm:$0xff]  ;;  %s1461_s4 = sphi %s1574_s4, %s175_s4  }
 0x11a   : > { %1250 = vmatprep.subr.mxu0 %v1468_v14  ;;  %1252 = vmatprep.mubr.msk.f32.mxu0 %vm1469_vm2, %v1468_v14  ;;  %s177_s9 = scalar_lea.vmem [#allocation2], %s1192_s2  ;;  %s1471_s11 = smov 120   ;;  %v591_v48 = vld [vmem:[#allocation9 + $0x8] sm:$0xff]  ;;  %v836_v9 = vld [vmem:[#allocation9 + $0x10] sm:$0xff] }
 0x11b   : > { %1255 = vmatprep.subr.mxu1 %v1468_v14  ;;  %1257 = vmatprep.mubr.msk.f32.mxu1 %vm1469_vm2, %v1468_v14  ;;  %s1472_s12 = smov 88   ;;  %s1473_s13 = smov 64  }
 0x11c   : > { %s1474_s14 = smov 56   ;;  %s1475_s15 = smov 80  }
 0x11d   : > { %s1476_s16 = smov 112   ;;  %s1632_s1 = scalar_lea.vmem [#allocation3], %s1192_s2 }
 0x11e   : > { %v345_v49 = vld [vmem:[%s1632_s1] sm:$0xff]  ;;  %s1477_s17 = smov 72   ;;  %s1478_s18 = smov 104  }
 0x11f   : > { %v1588_v15 = vld [vmem:[%s177_s9] sm:$0xff]  ;;  %s1479_s19 = smov 48   ;;  %s1480_s20 = smov 40  }
 0x120   : > { %180 = vrot.lane.b32.xlu0 %v1588_v15, %s1470_s10  ;;  %424 = vrot.lane.b32.xlu1 %v1588_v15, %s1471_s11  ;;  %s175_s4 = sadd.s32 1, %s1461_s4  }
 0x121   : > { %p172_p10 = scmp.ge.s32.totalorder %s175_s4, 2  }
 0x122   :  { %s1481_s22 = smov (%p172_p10), [#allocation10]  }
 0x123   :  { %s1166_s23 = sshll.u32 (%p172_p10), %s1481_s22, 4  ;;  %s1167_s23 = int_to_ptr.vmem [resolvable:$true] %s1166_s23 }
 0x124   : > { %426 = vrot.lane.b32.xlu0 %v1588_v15, %s1472_s12  ;;  %s1427_s24 = scalar_lea.vmem (%p172_p10), %s1167_s23, 256  ;;  %p1432_p12 = scmp.lt.s32.totalorder (%p172_p10), %s1167_s23, %s1167_s23 }
 0x125   :  { %p1428_p11 = scmp.ne.s32.totalorder (%p172_p10), %s1167_s23, %s1427_s24  ;;  %p1433_p13 = scmp.lt.s32.totalorder (%p172_p10), %s1427_s24, %s1427_s24 }
 0x127   :  { %p1434_p0 = por (%p172_p10), %p1433_p13, %p1432_p12 }
 0x129   :  { %p1435_p1 = pnand (%p172_p10), %p1434_p0, %p1428_p11 }
 0x192   : > { %v181_v16 = vpop.permute.xlu0 %180  ;;  %v425_v18 = vpop.permute.xlu1 %424 }
 0x193   : > { %1251 = vmatpush3.xpose.msk.msra.mxu0 %vm182_vm3, %v181_v16 }
 0x194   : > { %1265 = vmatprep.subr.mxu0 %v1468_v14 }
 0x196   : > { %1253 = vmatmul.mubr.msk.f32.vlgmr.msra.gmra.mrb[0].mxu0 %vm182_vm3, %v1588_v15  ;;  %v427_v17 = vpop.permute.xlu0 %426 }
 0x197   : > { %1266 = vmatpush3.xpose.msk.msra.mxu0 %vm182_vm3, %v427_v17  ;;  %1267 = vmatprep.mubr.msk.f32.mxu0 %vm1469_vm2, %v1468_v14 }
 0x198   : > { %1275 = vmatprep.subr.mxu0 %v1468_v14 }
 0x19a   : > { %1268 = vmatmul.mubr.msk.f32.vlgmr.msra.gmra.mrb[2].mxu0 %vm182_vm3, %v425_v18 }
 0x19b   : > { %1277 = vmatprep.mubr.msk.f32.mxu0 %vm1469_vm2, %v1468_v14  ;;  %1276 = vmatpush3.msra.mxu0 %v591_v48 }
 0x19c   : > { %1285 = vmatprep.subr.mxu0 %v1468_v14 }
 0x269   : > { %v253_v19 = vpop.f32.mrb[0].mxu0 }
 0x26a   : > { %v1254_v20 = vpop.f32.mrb[1].mxu0  ;;  %v257_v21 = vsel %vm182_vm3, %v253_v19, -inf }
 0x26b   : > { %258 = vmax.xlane.f32.xlu1 %v257_v21 }
 0x26d   : > { %v498_v22 = vpop.f32.mrb[2].mxu0 }
 0x26e   : > { %v502_v23 = vsel %vm182_vm3, %v498_v22, -inf  ;;  %v1269_v24 = vpop.f32.mrb[3].mxu0 }
 0x26f   : > { %503 = vmax.xlane.f32.xlu1 %v502_v23 }
 0x2f8   : > { %v259_v25 = vpop.xlane.xlu1 %258 }
 0x2f9   : > { %v260_v26 = vsub.f32 %v253_v19, %v259_v25 }
 0x2fb   : > { %v261_v27 = vmul.f32 1.442695, %v260_v26 }
 0x2fc   : > { %v504_v28 = vpop.xlane.xlu1 %503 }
 0x2fd   : > { %1345 = vpow2.f32 %v261_v27  ;;  %v505_v29 = vsub.f32 %v498_v22, %v504_v28 }
 0x2ff   : > { %v506_v30 = vmul.f32 1.442695, %v505_v29 }
 0x301   : > { %1347 = vpow2.f32 %v506_v30 }
 0x307   : > { %v1346_v31 = vpop.eup %1345 }
 0x308   : > { %v263_v32 = vsel %vm182_vm3, %v1346_v31, 0.0 }
 0x309   : > { %264 = vadd.xlane.f32.xlu0 %v263_v32 }
 0x30b   : > { %v1348_v33 = vpop.eup %1347 }
 0x30c   : > { %v508_v34 = vsel %vm182_vm3, %v1348_v33, 0.0 }
 0x30d   : > { %509 = vadd.xlane.f32.xlu1 %v508_v34 }
 0x31e   : > { %513 = vrot.lane.b32.xlu1 %v1588_v15, %s1474_s14 }
 0x31f   : > { %268 = vrot.lane.b32.xlu0 %v1588_v15, %s1473_s13 }
 0x323   : > { %671 = vrot.lane.b32.xlu0 %v1588_v15, %s1475_s15 }
 0x327   : > { %669 = vrot.lane.b32.xlu0 %v1588_v15, %s1476_s16 }
 0x396   : > { %v265_v35 = vpop.xlane.xlu0 %264 }
 0x397   : > { %1349 = vrcp.f32 %v265_v35 }
 0x39a   : > { %v269_v36 = vpop.permute.xlu0 %268  ;;  %v510_v40 = vpop.xlane.xlu1 %509 }
 0x39b   : > { %1256 = vmatpush3.msra.mxu1 %v269_v36  ;;  %1351 = vrcp.f32 %v510_v40 }
 0x39c   : > { %1260 = vmatprep.subr.mxu1 %v1468_v14 }
 0x39e   : > { %v514_v41 = vpop.permute.xlu1 %513  ;;  %v672_v46 = vpop.permute.xlu0 %671 }
 0x3a1   : > { %v1350_v37 = vpop.eup %1349 }
 0x3a2   : > { %v267_v38 = vmul.f32 %v1350_v37, %v1346_v31  ;;  %v670_v47 = vpop.permute.xlu0 %669 }
 0x3a4   : > { %1258 = vmatmul.mubr.msk.f32.vlgmr.msra.gmra.mrb[0].mxu1 %vm182_vm3, %v267_v38 }
 0x3a5   : > { %1261 = vmatpush3.msra.mxu1 %v346_v39  ;;  %1262 = vmatprep.mubr.msk.f32.mxu1 %vm1469_vm2, %v1468_v14  ;;  %v1352_v42 = vpop.eup %1351 }
 0x3a6   : > { %1270 = vmatprep.subr.mxu1 %v1468_v14  ;;  %v512_v45 = vmul.f32 %v1352_v42, %v1348_v33 }
 0x477   : > { %v340_v43 = vpop.f32.mrb[0].mxu1 }
 0x478   : > { %v1259_v44 = vpop.f32.mrb[1].mxu1  ;;  %1263 = vmatmul.mubr.msk.f32.vlgmr.msra.gmra.mrb[2].mxu1 %vm182_vm3, %v340_v43 }
 0x479   : > { %1271 = vmatpush3.msra.mxu1 %v514_v41  ;;  %1272 = vmatprep.mubr.msk.f32.mxu1 %vm1469_vm2, %v1468_v14 }
 0x47a   : > { %1280 = vmatprep.subr.mxu1 %v1468_v14 }
 0x47c   : > { %1273 = vmatmul.mubr.msk.f32.vlgmr.msra.gmra.mrb[4].mxu1 %vm182_vm3, %v512_v45 }
 0x47d   : > { %1282 = vmatprep.mubr.msk.f32.mxu1 %vm1469_vm2, %v1468_v14 }
 0x480   : > { %1281 = vmatpush3.xpose.msk.msra.mxu1 %vm182_vm3, %v672_v46 }
 0x481   : > { %1290 = vmatprep.subr.mxu1 %v1468_v14 }
 0x483   : > { %1283 = vmatmul.mubr.msk.f32.vlgmr.msra.gmra.mrb[6].mxu1 %vm182_vm3, %v670_v47 }
 0x484   : > { %1292 = vmatprep.mubr.msk.f32.mxu1 %vm1469_vm2, %v1468_v14  ;;  %1291 = vmatpush3.msra.mxu1 %v836_v9 }
 0x485   : > { %1300 = vmatprep.subr.mxu1 %v1468_v14 }
 0x54b   : > { %v416_v50 = vpop.f32.mrb[2].mxu1 }
 0x54c   : > { %v420_v51 = vadd.f32 %v416_v50, %v345_v49  ;;  %v1264_v52 = vpop.f32.mrb[3].mxu1 }
 0x54e   : > { %421 = vst.msk [vmem:[%s1632_s1] sm:$0xff] %vm75_vm0, %v420_v51 }
 0x54f   : > { %v585_v53 = vpop.f32.mrb[4].mxu1 }
 0x550   : > { %v1274_v54 = vpop.f32.mrb[5].mxu1  ;;  %1278 = vmatmul.mubr.msk.f32.vlgmr.msra.gmra.mrb[4].mxu0 %vm182_vm3, %v585_v53 }
 0x551   : > { %1287 = vmatprep.mubr.msk.f32.mxu0 %vm1469_vm2, %v1468_v14 }
 0x555   : > { %v589_v63 = vld [vmem:[%s1632_s1] sm:$0xff] }
 0x556   : > { %v743_v55 = vpop.f32.mrb[6].mxu1 }
 0x557   : > { %v1284_v56 = vpop.f32.mrb[7].mxu1  ;;  %v747_v57 = vsel %vm182_vm3, %v743_v55, -inf }
 0x558   : > { %748 = vmax.xlane.f32.xlu1 %v747_v57 }
 0x569   : > { %916 = vrot.lane.b32.xlu1 %v1588_v15, %s1477_s17 }
 0x56d   : > { %914 = vrot.lane.b32.xlu1 %v1588_v15, %s1478_s18 }
 0x5e5   : > { %v749_v58 = vpop.xlane.xlu1 %748 }
 0x5e6   : > { %v750_v59 = vsub.f32 %v743_v55, %v749_v58 }
 0x5e8   : > { %v751_v60 = vmul.f32 1.442695, %v750_v59 }
 0x5e9   : > { %v917_v5 = vpop.permute.xlu1 %916 }
 0x5ea   : > { %1353 = vpow2.f32 %v751_v60 }
 0x5ed   : > { %v915_v8 = vpop.permute.xlu1 %914 }
 0x5f4   : > { %v1354_v61 = vpop.eup %1353 }
 0x5f5   : > { %v753_v62 = vsel %vm182_vm3, %v1354_v61, 0.0 }
 0x5f6   : > { %754 = vadd.xlane.f32.xlu0 %v753_v62 }
 0x60c   : > { %758 = vrot.lane.b32.xlu0 %v1588_v15, %s1479_s19 }
 0x623   : > { %v661_v0 = vpop.f32.mrb[4].mxu0 }
 0x624   : > { %v665_v1 = vadd.f32 %v661_v0, %v589_v63  ;;  %v1279_v2 = vpop.f32.mrb[5].mxu0 }
 0x626   : > { %666 = vst.msk [vmem:[%s1632_s1] sm:$0xff] %vm75_vm0, %v665_v1 }
 0x62d   : > { %v834_v23 = vld [vmem:[%s1632_s1] sm:$0xff] }
 0x683   : > { %v755_v3 = vpop.xlane.xlu0 %754 }
 0x684   : > { %1355 = vrcp.f32 %v755_v3 }
 0x687   : > { %v759_v4 = vpop.permute.xlu0 %758 }
 0x688   : > { %1286 = vmatpush3.msra.mxu0 %v759_v4 }
 0x689   : > { %1295 = vmatprep.subr.mxu0 %v1468_v14 }
 0x68e   : > { %v1356_v6 = vpop.eup %1355 }
 0x68f   : > { %v757_v7 = vmul.f32 %v1356_v6, %v1354_v61 }
 0x691   : > { %1288 = vmatmul.mubr.msk.f32.vlgmr.msra.gmra.mrb[6].mxu0 %vm182_vm3, %v757_v7 }
 0x692   : > { %1296 = vmatpush3.xpose.msk.msra.mxu0 %vm182_vm3, %v917_v5  ;;  %1297 = vmatprep.mubr.msk.f32.mxu0 %vm1469_vm2, %v1468_v14 }
 0x693   : > { %1305 = vmatprep.subr.mxu0 %v1468_v14 }
 0x695   : > { %1298 = vmatmul.mubr.msk.f32.vlgmr.msra.gmra.mrb[8].mxu0 %vm182_vm3, %v915_v8 }
 0x696   : > { %1307 = vmatprep.mubr.msk.f32.mxu0 %vm1469_vm2, %v1468_v14 }
 0x764   : > { %v830_v10 = vpop.f32.mrb[6].mxu0 }
 0x765   : > { %v1289_v11 = vpop.f32.mrb[7].mxu0  ;;  %1293 = vmatmul.mubr.msk.f32.vlgmr.msra.gmra.mrb[8].mxu1 %vm182_vm3, %v830_v10 }
 0x766   : > { %1302 = vmatprep.mubr.msk.f32.mxu1 %vm1469_vm2, %v1468_v14  ;;  %v1081_v14 = vld [vmem:[#allocation9 + $0x18] sm:$0xff] }
 0x767   : > { %1306 = vmatpush3.msra.mxu0 %v1081_v14 }
 0x768   : > { %v988_v12 = vpop.f32.mrb[8].mxu0 }
 0x769   : > { %v1299_v13 = vpop.f32.mrb[9].mxu0  ;;  %v992_v16 = vsel %vm182_vm3, %v988_v12, -inf }
 0x76a   : > { %993 = vmax.xlane.f32.xlu0 %v992_v16 }
 0x780   : > { %1003 = vrot.lane.b32.xlu0 %v1588_v15, %s1480_s20 }
 0x7f7   : > { %v994_v17 = vpop.xlane.xlu0 %993 }
 0x7f8   : > { %v995_v18 = vsub.f32 %v988_v12, %v994_v17 }
 0x7fa   : > { %v996_v19 = vmul.f32 1.442695, %v995_v18 }
 0x7fb   : > { %v1004_v22 = vpop.permute.xlu0 %1003 }
 0x7fc   : > { %1357 = vpow2.f32 %v996_v19  ;;  %1301 = vmatpush3.msra.mxu1 %v1004_v22 }
 0x806   : > { %v1358_v20 = vpop.eup %1357 }
 0x807   : > { %v998_v21 = vsel %vm182_vm3, %v1358_v20, 0.0 }
 0x808   : > { %999 = vadd.xlane.f32.xlu1 %v998_v21 }
 0x838   : > { %v906_v24 = vpop.f32.mrb[8].mxu1 }
 0x839   : > { %v910_v25 = vadd.f32 %v906_v24, %v834_v23  ;;  %v1294_v26 = vpop.f32.mrb[9].mxu1 }
 0x83b   : > { %911 = vst.msk [vmem:[%s1632_s1] sm:$0xff] %vm75_vm0, %v910_v25 }
 0x842   : > { %v1079_v31 = vld [vmem:[%s1632_s1] sm:$0xff] }
 0x895   : > { %v1000_v15 = vpop.xlane.xlu1 %999 }
 0x896   : > { %1359 = vrcp.f32 %v1000_v15 }
 0x8a0   : > { %v1360_v27 = vpop.eup %1359 }
 0x8a1   : > { %v1002_v28 = vmul.f32 %v1360_v27, %v1358_v20 }
 0x8a3   : > { %1303 = vmatmul.mubr.msk.f32.vlgmr.msra.gmra.mrb[10].mxu1 %vm182_vm3, %v1002_v28 }
 0x976   : > { %v1075_v29 = vpop.f32.mrb[10].mxu1 }
 0x977   : > { %v1304_v30 = vpop.f32.mrb[11].mxu1  ;;  %1308 = vmatmul.mubr.msk.f32.vlgmr.msra.gmra.mrb[10].mxu0 %vm182_vm3, %v1075_v29 }
 0xa47   :  { %174 = sbr.rel (!%p172_p10) target bundleno = 281 (0x119), region = 64 }
 0xa4a   : > { %v1151_v32 = vpop.f32.mrb[10].mxu0 }
 0xa4b   : > { %v1155_v33 = vadd.f32 %v1151_v32, %v1079_v31  ;;  %v1309_v34 = vpop.f32.mrb[11].mxu0 }
 0xa4d   : > { %1156 = vst.msk [vmem:[%s1632_s1] sm:$0xff] %vm75_vm0, %v1155_v33 }
 0xa54   :  { %v1157_v35 = vld [vmem:[#allocation3] sm:$0xff]  ;;  %v1158_v36 = vld [vmem:[#allocation3 + $0x8] sm:$0xff] }
 0xa55   :  { %1159 = vst.msk [vmem:[#allocation10] sm:$0xff] %vm75_vm0, %v1157_v35  ;;  %1160 = vst.msk [vmem:[#allocation10 + $0x8] sm:$0xff] %vm75_vm0, %v1158_v36 }
 0xa56   :  { %1438 = shalt.err (!%p1435_p1)
}
 0xa57   :  { %s1439_s27 = scalar_lea.hbm %s1697_s5, 256 }
 0xa58   :  { %p1440_p2 = scmp.ne.s32.totalorder %s1697_s5, %s1439_s27  ;;  %p1443_p3 = scmp.lt.u32.totalorder %s1439_s27, %s1697_s5 }
 0xa5a   :  { %p1445_p4 = pnand %p1443_p3, %p1440_p2 }
 0xa5c   :  { %1448 = shalt.err (!%p1445_p4)
}
 0xa5d   :  { %1172 = dma.vmem_to_hbm [thread:$0]  %s1167_s23, 256, %s1697_s5, [#allocation6], %s1465_s30, %s1465_s30, %s1466_s6  }
 0xa5e   :  { %1457 = dma.done.wait [#allocation6], 256  }
 0xa5f   :  { %1458 = vsyncadd [#allocation6], 4294967040 }
 0xa60   :  { %1176 = vsyncpa [#allocation5], 1 }
 0xa61   :  { %1177 = vsyncpa [#allocation8], 1 }
 0xa62   :  { %1178 = vsyncpa [#allocation6], 1 }

</bundles_post_ra>
